<compile_context>
chip_gen: v7x
topology: tpu7x:2x2x1
jax: 0.10.0
libtpu: 0.0.40
codegen_flags: <defaults>
</compile_context>

<pallas_src>
import jax
import jax.numpy as jnp
from jax.experimental import pallas as pl
from jax.experimental.pallas import tpu as pltpu


def _cdiv(a, b):
    return (a + b - 1) // b


def _make_tiled_kernel(K, D, T_L, crip):
    def kernel(x_ref, halo_ref, wconv_ref, bconv_ref, wproj_ref, bproj_ref, out_ref):
        # x_ref block:    (1, C_in, T_L)   — this tile's main input window.
        # halo_ref block: (1, C_in, H_pad) — lane-aligned slab right after it.
        x_main = x_ref[0]                                        # (C_in, T_L)
        # Seam at a 128-aligned lane offset -> cheap sub-block copy, no
        # lane realignment.  Only the first `halo` columns of the slab are
        # ever addressed by the tap windows below.
        xw = jnp.concatenate([x_main, halo_ref[0]], axis=-1)     # (C_in, T_L + H_pad)

        # Dilated 'valid' conv as K shifted (F, C_in) @ (C_in, T_L) matmuls;
        # accumulator initialized by tap 0 (no zeros materialization).
        acc = jnp.dot(wconv_ref[0], x_main, preferred_element_type=jnp.float32)
        for k in range(1, K):
            acc = acc + jnp.dot(wconv_ref[k], xw[:, k * D:k * D + T_L],
                                preferred_element_type=jnp.float32)
        conv_out = jnp.maximum(acc + bconv_ref[...], 0.0)

        # 1x1 conv ("x projection") on the center-cropped window.
        proj = jnp.dot(wproj_ref[...], xw[:, crip:crip + T_L],
                       preferred_element_type=jnp.float32) + bproj_ref[...]

        # Lane-dense store: T_L is a multiple of 128 (last tile is clipped by
        # Pallas if L_out is ragged).
        out_ref[0] = (conv_out + proj).astype(out_ref.dtype)

    return kernel


def _make_small_kernel(K, D, L_out, crip):
    # Tiny-sequence path: one block per batch element, full row in VMEM.
    def kernel(x_ref, wconv_ref, bconv_ref, wproj_ref, bproj_ref, out_ref):
        xw = x_ref[0]                                            # (C_in, L)
        acc = jnp.dot(wconv_ref[0], xw[:, 0:L_out], preferred_element_type=jnp.float32)
        for k in range(1, K):
            acc = acc + jnp.dot(wconv_ref[k], xw[:, k * D:k * D + L_out],
                                preferred_element_type=jnp.float32)
        conv_out = jnp.maximum(acc + bconv_ref[...], 0.0)
        proj = jnp.dot(wproj_ref[...], xw[:, crip:crip + L_out],
                       preferred_element_type=jnp.float32) + bproj_ref[...]
        out_ref[0] = (conv_out + proj).astype(out_ref.dtype)

    return kernel


def residual_conv_with_x_projection(x_ncl, w_conv, b_conv, w_proj, b_proj,
                                    dilation, *, tile_len=None):
    """x_ncl: (B, C_in, L) as in PyTorch; returns (B, F, L_out) in NCL."""
    B, C_in, L = x_ncl.shape
    F, C_in_w, K = w_conv.shape
    assert C_in_w == C_in
    D = int(dilation)

    halo = D * (K - 1)
    # The torch module slices x[:, :, crip:-crip]; that only lines up with the
    # conv output when the dilated receptive span is even and nonzero.
    assert halo > 0 and halo % 2 == 0, "D*(K-1) must be even and > 0"
    crip = halo // 2
    L_out = L - halo
    assert L_out > 0

    # Weight layout for (F, C_in) @ (C_in, T_L) matmuls in NCL space.
    w_conv_kfc = jnp.transpose(w_conv, (2, 0, 1))        # (K, F, C_in)
    w_proj_fc = w_proj[:, :, 0]                          # (F, C_in)
    b_conv_2d = b_conv.reshape(F, 1).astype(jnp.float32)  # lane-broadcast columns
    b_proj_2d = b_proj.reshape(F, 1).astype(jnp.float32)

    isz = jnp.dtype(x_ncl.dtype).itemsize
    osz = isz
    H_pad = _cdiv(max(halo, 1), 128) * 128               # lane-aligned halo slab

    # ------------------------- small path ----------------------------------
    if L_out < H_pad:
        kernel = _make_small_kernel(K, D, L_out, crip)
        return pl.pallas_call(
            kernel,
            out_shape=jax.ShapeDtypeStruct((B, F, L_out), x_ncl.dtype),
            grid_spec=pltpu.PrefetchScalarGridSpec(
                num_scalar_prefetch=0,
                grid=(B,),
                in_specs=[
                    pl.BlockSpec((1, C_in, L), lambda b: (b, 0, 0)),
                    pl.BlockSpec((K, F, C_in), lambda b: (0, 0, 0)),
                    pl.BlockSpec((F, 1), lambda b: (0, 0)),
                    pl.BlockSpec((F, C_in), lambda b: (0, 0)),
                    pl.BlockSpec((F, 1), lambda b: (0, 0)),
                ],
                out_specs=pl.BlockSpec((1, F, L_out), lambda b: (b, 0, 0)),
            ),
            compiler_params=pltpu.CompilerParams(
                dimension_semantics=("parallel",)),
        )(x_ncl, w_conv_kfc, b_conv_2d, w_proj_fc, b_proj_2d)

    # ------------------------- tiled path -----------------------------------
    # Tile length: ~1 MiB of output per grid step (amortizes the ~0.35 us
    # per-step overhead) while keeping the per-step VMEM working set under
    # ~12 MiB so the default scoped VMEM limit suffices on every generation.
    bytes_per_lane = (2 * C_in * isz      # double-buffered input block
                      + 2 * F * osz       # double-buffered output block
                      + 2 * C_in * 4      # concat window + one shifted-slice temp
                      + 4 * F * 4)        # acc / conv_out / proj / sum (f32)
    t_budget = (12 << 20) // bytes_per_lane
    t_target = max(128, (1 << 20) // (F * osz))
    T_L = min(t_budget, t_target, L_out)
    if tile_len is not None:
        T_L = min(int(tile_len), L_out)
    T_L = max(H_pad, (T_L // H_pad) * H_pad)   # multiple of H_pad (hence of 128)
    num_tiles = _cdiv(L_out, T_L)

    n_hblocks = _cdiv(L, H_pad)
    hb_per_tile = T_L // H_pad

    def halo_index(b, j):
        # Slab immediately following this tile's main window.  For the ragged
        # last tile the unclamped offset can fall past the end of x; clamping
        # to the last valid slab is safe because in exactly that case the halo
        # only feeds output columns that are clipped by the partial out block.
        return (b, 0, jnp.minimum((j + 1) * hb_per_tile, n_hblocks - 1))

    kernel = _make_tiled_kernel(K, D, T_L, crip)

    # Megacore split: batch axis when B >= 2, otherwise the (halo-tiled)
    # sequence axis so a single-batch call still uses both v7x TensorCores.
    dims = ("parallel", "arbitrary") if B >= 2 else ("parallel", "parallel")
    cp_kwargs = dict(dimension_semantics=dims)

    # Generation-aware VMEM limit — only needed if a user-supplied tile_len
    # pushes the working set above the default scoped limit.
    ws_est = (bytes_per_lane * T_L
              + 2 * C_in * H_pad * isz
              + (K * F * C_in + F * C_in) * jnp.dtype(w_conv.dtype).itemsize
              + 2 * F * 4)
    if ws_est > (12 << 20):
        try:
            cap = int(pltpu.get_tpu_info().vmem_capacity_bytes)
        except Exception:
            cap = 64 << 20                 # conservative: v7x physical VMEM
        cp_kwargs["vmem_limit_bytes"] = int(min(ws_est * 1.4 + (2 << 20),
                                                cap - (8 << 20)))

    out = pl.pallas_call(
        kernel,
        out_shape=jax.ShapeDtypeStruct((B, F, L_out), x_ncl.dtype),
        grid_spec=pltpu.PrefetchScalarGridSpec(
            num_scalar_prefetch=0,
            grid=(B, num_tiles),
            in_specs=[
                # Main window of this tile (halo-tiled: VMEM bounded in L).
                pl.BlockSpec((1, C_in, T_L), lambda b, j: (b, 0, j)),
                # Small lane-aligned slab right after the main window (halo).
                pl.BlockSpec((1, C_in, H_pad), halo_index),
                pl.BlockSpec((K, F, C_in), lambda b, j: (0, 0, 0)),
                pl.BlockSpec((F, 1), lambda b, j: (0, 0)),
                pl.BlockSpec((F, C_in), lambda b, j: (0, 0)),
                pl.BlockSpec((F, 1), lambda b, j: (0, 0)),
            ],
            out_specs=pl.BlockSpec((1, F, T_L), lambda b, j: (b, 0, j)),
        ),
        compiler_params=pltpu.CompilerParams(**cp_kwargs),
    )(x_ncl, x_ncl, w_conv_kfc, b_conv_2d, w_proj_fc, b_proj_2d)

    return out


def reference_forward(x_ncl, w_conv, b_conv, w_proj, b_proj, dilation):
    """Pure-JAX reference mirroring PyTorch Conv1d semantics."""
    conv = jax.lax.conv_general_dilated(
        x_ncl, w_conv,
        window_strides=(1,), padding="VALID",
        rhs_dilation=(dilation,),
        dimension_numbers=("NCH", "OIH", "NCH"),
    ) + b_conv[None, :, None]
    conv = jnp.maximum(conv, 0.0)
    L, L_out = x_ncl.shape[2], conv.shape[2]
    crip = (L - L_out) // 2
    x_crop = x_ncl[:, :, crip: L - crip]
    proj = jax.lax.conv_general_dilated(
        x_crop, w_proj,
        window_strides=(1,), padding="VALID",
        dimension_numbers=("NCH", "OIH", "NCH"),
    ) + b_proj[None, :, None]
    return conv + proj


def _init_params(key, c_in, filters, kernel_size):
    kw1, kb1, kw2, kb2 = jax.random.split(key, 4)
    bound1 = 1.0 / (c_in * kernel_size) ** 0.5
    w_conv = jax.random.uniform(kw1, (filters, c_in, kernel_size),
                                minval=-bound1, maxval=bound1, dtype=jnp.float32)
    b_conv = jax.random.uniform(kb1, (filters,),
                                minval=-bound1, maxval=bound1, dtype=jnp.float32)
    bound2 = 1.0 / c_in ** 0.5
    w_proj = jax.random.uniform(kw2, (filters, c_in, 1),
                                minval=-bound2, maxval=bound2, dtype=jnp.float32)
    b_proj = jax.random.uniform(kb2, (filters,),
                                minval=-bound2, maxval=bound2, dtype=jnp.float32)
    return w_conv, b_conv, w_proj, b_proj


if __name__ == "__main__":
    key = jax.random.PRNGKey(0)

    configs = [
        # (B, C_in, filters, K, dilation, L, tile_len)
        (2, 4, 8, 3, 2, 16,   None),  # small path:  L_out=12, single tiny block
        (2, 4, 8, 3, 2, 1028, None),  # tiled path:  L_out=1024, one lane-dense tile
        (2, 4, 8, 3, 2, 1004, 256),   # tiled path:  L_out=1000, 4 tiles incl. ragged last + halo slabs
    ]
    for (B, C_in, F, K, D, L, tl) in configs:
        kx, kp, key = jax.random.split(key, 3)
        x = jax.random.normal(kx, (B, C_in, L), dtype=jnp.float32)
        w_conv, b_conv, w_proj, b_proj = _init_params(kp, C_in, F, K)

        out = residual_conv_with_x_projection(
            x, w_conv, b_conv, w_proj, b_proj, D, tile_len=tl)
        out = jax.block_until_ready(out)

        ref = reference_forward(x, w_conv, b_conv, w_proj, b_proj, D)
        assert out.shape == ref.shape, (out.shape, ref.shape)
        assert jnp.allclose(out, ref, atol=1e-4, rtol=1e-4), \
            f"mismatch vs reference for L={L}, tile_len={tl}"

    print("KERNEL_OK")
</pallas_src>

<mosaic_0001>
module attributes {stable_mosaic.version = 11 : i64} {
  func.func @kernel(%arg0: i32, %arg1: memref<1x4x16xf32, #tpu.memory_space<vmem>>, %arg2: memref<3x8x4xf32, #tpu.memory_space<vmem>>, %arg3: memref<8x1xf32, #tpu.memory_space<vmem>>, %arg4: memref<8x4xf32, #tpu.memory_space<vmem>>, %arg5: memref<8x1xf32, #tpu.memory_space<vmem>>, %arg6: memref<1x8x12xf32, #tpu.memory_space<vmem>>) attributes {dimension_semantics = [#tpu.dimension_semantics<parallel>], iteration_bounds = array<i64: 2>, scalar_prefetch = 0 : i64, scratch_operands = 0 : i64, tpu.core_type = #tpu.core_type<tc>, window_params = [{transform_indices = @transform_0, window_bounds = array<i64: 1, 4, 16>}, {pipeline_mode = #tpu.pipeline_mode<synchronous>, transform_indices = @transform_1, window_bounds = array<i64: 3, 8, 4>}, {pipeline_mode = #tpu.pipeline_mode<synchronous>, transform_indices = @transform_2, window_bounds = array<i64: 8, 1>}, {pipeline_mode = #tpu.pipeline_mode<synchronous>, transform_indices = @transform_3, window_bounds = array<i64: 8, 4>}, {pipeline_mode = #tpu.pipeline_mode<synchronous>, transform_indices = @transform_4, window_bounds = array<i64: 8, 1>}, {transform_indices = @transform_5, window_bounds = array<i64: 1, 8, 12>}]} {
    %c0 = arith.constant 0 : index
    %c0_0 = arith.constant 0 : index
    %c0_1 = arith.constant 0 : index
    %0 = vector.load %arg1[%c0, %c0_0, %c0_1] : memref<1x4x16xf32, #tpu.memory_space<vmem>>, vector<1x4x16xf32>
    %1 = vector.shape_cast %0 : vector<1x4x16xf32> to vector<4x16xf32>
    %c0_2 = arith.constant 0 : index
    %c0_3 = arith.constant 0 : index
    %c0_4 = arith.constant 0 : index
    %2 = vector.load %arg2[%c0_2, %c0_3, %c0_4] : memref<3x8x4xf32, #tpu.memory_space<vmem>>, vector<1x8x4xf32>
    %3 = vector.shape_cast %2 : vector<1x8x4xf32> to vector<8x4xf32>
    %4 = vector.extract_strided_slice %1 {offsets = [0, 0], sizes = [4, 12], strides = [1, 1]} : vector<4x16xf32> to vector<4x12xf32>
    %cst = arith.constant dense<0.000000e+00> : vector<8x12xf32>
    %5 = tpu.matmul %3, %4, %cst {dimension_numbers = #tpu.dot_dimension_numbers<[1], [0], [0], [1], [0, 0, 1, 1], [], []>} : vector<8x4xf32>, vector<4x12xf32>, vector<8x12xf32> -> vector<8x12xf32>
    %c1 = arith.constant 1 : index
    %c0_5 = arith.constant 0 : index
    %c0_6 = arith.constant 0 : index
    %6 = vector.load %arg2[%c1, %c0_5, %c0_6] : memref<3x8x4xf32, #tpu.memory_space<vmem>>, vector<1x8x4xf32>
    %7 = vector.shape_cast %6 : vector<1x8x4xf32> to vector<8x4xf32>
    %8 = vector.extract_strided_slice %1 {offsets = [0, 2], sizes = [4, 12], strides = [1, 1]} : vector<4x16xf32> to vector<4x12xf32>
    %cst_7 = arith.constant dense<0.000000e+00> : vector<8x12xf32>
    %9 = tpu.matmul %7, %8, %cst_7 {dimension_numbers = #tpu.dot_dimension_numbers<[1], [0], [0], [1], [0, 0, 1, 1], [], []>} : vector<8x4xf32>, vector<4x12xf32>, vector<8x12xf32> -> vector<8x12xf32>
    %10 = arith.addf %5, %9 : vector<8x12xf32>
    %c2 = arith.constant 2 : index
    %c0_8 = arith.constant 0 : index
    %c0_9 = arith.constant 0 : index
    %11 = vector.load %arg2[%c2, %c0_8, %c0_9] : memref<3x8x4xf32, #tpu.memory_space<vmem>>, vector<1x8x4xf32>
    %12 = vector.shape_cast %11 : vector<1x8x4xf32> to vector<8x4xf32>
    %13 = vector.extract_strided_slice %1 {offsets = [0, 4], sizes = [4, 12], strides = [1, 1]} : vector<4x16xf32> to vector<4x12xf32>
    %cst_10 = arith.constant dense<0.000000e+00> : vector<8x12xf32>
    %14 = tpu.matmul %12, %13, %cst_10 {dimension_numbers = #tpu.dot_dimension_numbers<[1], [0], [0], [1], [0, 0, 1, 1], [], []>} : vector<8x4xf32>, vector<4x12xf32>, vector<8x12xf32> -> vector<8x12xf32>
    %15 = arith.addf %10, %14 : vector<8x12xf32>
    %c0_11 = arith.constant 0 : index
    %c0_12 = arith.constant 0 : index
    %16 = vector.load %arg3[%c0_11, %c0_12] : memref<8x1xf32, #tpu.memory_space<vmem>>, vector<8x1xf32>
    %17 = vector.broadcast %16 : vector<8x1xf32> to vector<8x12xf32>
    %18 = arith.addf %15, %17 : vector<8x12xf32>
    %cst_13 = arith.constant 0.000000e+00 : f32
    %19 = vector.broadcast %cst_13 : f32 to vector<8x12xf32>
    %20 = arith.maximumf %18, %19 : vector<8x12xf32>
    %c0_14 = arith.constant 0 : index
    %c0_15 = arith.constant 0 : index
    %21 = vector.load %arg4[%c0_14, %c0_15] : memref<8x4xf32, #tpu.memory_space<vmem>>, vector<8x4xf32>
    %22 = vector.extract_strided_slice %1 {offsets = [0, 2], sizes = [4, 12], strides = [1, 1]} : vector<4x16xf32> to vector<4x12xf32>
    %cst_16 = arith.constant dense<0.000000e+00> : vector<8x12xf32>
    %23 = tpu.matmul %21, %22, %cst_16 {dimension_numbers = #tpu.dot_dimension_numbers<[1], [0], [0], [1], [0, 0, 1, 1], [], []>} : vector<8x4xf32>, vector<4x12xf32>, vector<8x12xf32> -> vector<8x12xf32>
    %c0_17 = arith.constant 0 : index
    %c0_18 = arith.constant 0 : index
    %24 = vector.load %arg5[%c0_17, %c0_18] : memref<8x1xf32, #tpu.memory_space<vmem>>, vector<8x1xf32>
    %25 = vector.broadcast %24 : vector<8x1xf32> to vector<8x12xf32>
    %26 = arith.addf %23, %25 : vector<8x12xf32>
    %27 = arith.addf %20, %26 : vector<8x12xf32>
    %c0_19 = arith.constant 0 : index
    %c0_20 = arith.constant 0 : index
    %c0_21 = arith.constant 0 : index
    %28 = vector.load %arg6[%c0_19, %c0_20, %c0_21] : memref<1x8x12xf32, #tpu.memory_space<vmem>>, vector<1x8x12xf32>
    %29 = vector.shape_cast %28 : vector<1x8x12xf32> to vector<8x12xf32>
    %30 = vector.shape_cast %27 : vector<8x12xf32> to vector<1x8x12xf32>
    tpu.vector_store %arg6[%c0_19, %c0_20, %c0_21], %30 {strides = array<i32>} : memref<1x8x12xf32, #tpu.memory_space<vmem>>, vector<1x8x12xf32>,
    return
  }
  func.func @transform_0(%arg0: i32) -> (i32, i32, i32) {
    %c0_i32 = arith.constant 0 : i32
    %c0_i32_0 = arith.constant 0 : i32
    %c0_i32_1 = arith.constant 0 : i32
    return %arg0, %c0_i32, %c0_i32_0 : i32, i32, i32
  }
  func.func @transform_1(%arg0: i32) -> (i32, i32, i32) {
    %c0_i32 = arith.constant 0 : i32
    %c0_i32_0 = arith.constant 0 : i32
    %c0_i32_1 = arith.constant 0 : i32
    %c0_i32_2 = arith.constant 0 : i32
    return %c0_i32, %c0_i32_0, %c0_i32_1 : i32, i32, i32
  }
  func.func @transform_2(%arg0: i32) -> (i32, i32) {
    %c0_i32 = arith.constant 0 : i32
    %c0_i32_0 = arith.constant 0 : i32
    %c0_i32_1 = arith.constant 0 : i32
    return %c0_i32, %c0_i32_0 : i32, i32
  }
  func.func @transform_3(%arg0: i32) -> (i32, i32) {
    %c0_i32 = arith.constant 0 : i32
    %c0_i32_0 = arith.constant 0 : i32
    %c0_i32_1 = arith.constant 0 : i32
    return %c0_i32, %c0_i32_0 : i32, i32
  }
  func.func @transform_4(%arg0: i32) -> (i32, i32) {
    %c0_i32 = arith.constant 0 : i32
    %c0_i32_0 = arith.constant 0 : i32
    %c0_i32_1 = arith.constant 0 : i32
    return %c0_i32, %c0_i32_0 : i32, i32
  }
  func.func @transform_5(%arg0: i32) -> (i32, i32, i32) {
    %c0_i32 = arith.constant 0 : i32
    %c0_i32_0 = arith.constant 0 : i32
    %c0_i32_1 = arith.constant 0 : i32
    return %arg0, %c0_i32, %c0_i32_0 : i32, i32, i32
  }
}

</mosaic_0001>

<bundles_post_ra>
// kernel: tpu_custom_call.1
= control target key start
LH: loop header
LB: loop body
LE: loop exit
PB: predicated region body
PF: predicated region fallthrough
CT: control target
= control target key end

     0   :  { %10 = vsyncpa [#allocation3], 0  ;;  %s947_s0 = inlined_call_operand.vmem [shape: f32[2,4,16], index: 0, kind: input, shape index: {}]   ;;  %s948_s1 = inlined_call_operand.vmem [shape: f32[3,8,4], index: 1, kind: input, shape index: {}]   ;;  %s949_s2 = inlined_call_operand.vmem [shape: f32[8,1], index: 2, kind: input, shape index: {}]   ;;  %s950_s3 = inlined_call_operand.vmem [shape: f32[8,4], index: 3, kind: input, shape index: {}]   ;;  %s951_s4 = inlined_call_operand.vmem [shape: f32[8,1], index: 4, kind: input, shape index: {}]   ;;  %s952_s5 = inlined_call_operand.hbm [shape: f32[2,8,12], index: 5, kind: output, shape index: {}]  }
   0x1   :  { %12 = vsyncpa [#allocation3 + $0x1], 0  ;;  %s817_s18 = smov 0   ;;  %s819_s19 = smov 0  }
   0x2   :  { %s821_s20 = smov 0   ;;  %s823_s21 = smov 0  }
   0x3 LB: > { %s838_s22 = sadd.s32 4294967295, %s779_s21   ;;  %s623_s23 = sadd.s32 4294967294, %s779_s21   ;;  %s779_s21 = sphi %s823_s21, %s958_s21   ;;  %s775_s20 = sphi %s821_s20, %s957_s20   ;;  %s771_s19 = sphi %s819_s19, %s956_s19   ;;  %s767_s18 = sphi %s817_s18, %s955_s18  }
   0x4   : > { %s842_s24 = sadd.s32 1, %s779_s21   ;;  %s135_s25 = sadd.s32 1, %s775_s20 }
   0x5   : > { %s132_s26 = ssub.s32 %s779_s21, %s842_s24  ;;  %p145_p0 = scmp.ne.s32.totalorder %s775_s20, %s771_s19 }
   0x6   : > { %p133_p1 = scmp.eq.s32.totalorder %s132_s26, 0  ;;  %p146_p2 = scmp.eq.s32.totalorder %s838_s22, 1 }
   0x7   : > { %p151_p3 = scmp.ne.s32.totalorder %s771_s19, %s767_s18  ;;  %p152_p4 = scmp.eq.s32.totalorder %s623_s23, 1 }
   0x8   : > { %s853_s27 = scalar_select %p133_p1, %s775_s20, %s135_s25  }
   0x9   : > { %p855_p5 = por %p146_p2, %p145_p0  ;;  %p859_p6 = por %p152_p4, %p151_p3 }
   0xa   : > { %p626_p7 = scmp.ge.s32.totalorder %s779_s21, 1  ;;  %p189_p8 = scmp.lt.s32.totalorder %s779_s21, 3 }
   0xc   : > { %p190_p9 = pnand %p626_p7, %p189_p8 }
   0xd   : > { %p216_p10 = scmp.lt.s32.totalorder (!%p190_p9), %s838_s22, 1  ;;  %v781_v0 = vmov (!%p190_p9), 0.0   ;;  %vm782_vm0 = vmmov (!%p190_p9), 0   ;;  %v459_v1 = vld [vmem:[%s949_s2] sm:$0xff] (!%p190_p9)  ;;  %v783_v2 = vmov (!%p190_p9), 0   ;;  %vm231_vm1 = vcmask (!%p190_p9), 1043456  }
   0xe   : > { %193 = sbr.rel (%p190_p9) target bundleno = 380 (0x17c), region = 40  ;;  %656 = vmatprep.subr.mxu1 (!%p190_p9), %v781_v0  ;;  %651 = vmatprep.subr.mxu0 (!%p190_p9), %v781_v0  ;;  %v221_v3 = vld [vmem:[%s948_s1] sm:$0xff] (!%p190_p9)  ;;  %vm227_vm2 = vcmask (!%p190_p9), 31744   ;;  %s784_s16 = smov (!%p190_p9), 126   ;;  %v629_v6 = vld [vmem:[%s948_s1 + $0x8] sm:$0xff] (!%p190_p9)  ;;  %v634_v9 = vld [vmem:[%s948_s1 + $0x10] sm:$0xff] (!%p190_p9) }
   0xf   : > { %658 = vmatprep.mubr.msk.f32.mxu1 (!%p190_p9), %vm782_vm0, %v781_v0  ;;  %653 = vmatprep.mubr.msk.f32.mxu0 (!%p190_p9), %vm782_vm0, %v781_v0  ;;  %v468_v5 = vld [vmem:[%s951_s4] sm:$0xff] (!%p190_p9)  ;;  %s785_s17 = smov (!%p190_p9), 124   ;;  %s640_s10 = sshll.u32 (!%p190_p9), %s838_s22, 7  ;;  %vm548_vm3 = vcmask (!%p190_p9), 97280  }
  0x10   : > { %715 = vset.pattern.permute.xlu1 (!%p190_p9), %v783_v2  ;;  %716 = vset.pattern.permute.xlu0 (!%p190_p9), %v783_v2  ;;  %v467_v8 = vld [vmem:[%s950_s3] sm:$0xff] (!%p190_p9)  ;;  %s905_s15 = scalar_lea.hbm (!%p190_p9), %s952_s5, %s640_s10 }
  0x11   : > { %462 = vperm.xlu1 (!%p190_p9), %715, %v459_v1  }
  0x15   : > { %s217_s30 = scalar_select %p216_p10, %s838_s22, 1  ;;  %471 = vperm.xlu1 %715, %v468_v5  }
  0x16   : > { %s786_s22 = smov [#allocation2]  }
  0x17   : > { %s628_s8 = sshll.u32 %s217_s30, 2  ;;  %s721_s23 = sshll.u32 %s786_s22, 4  ;;  %s722_s23 = int_to_ptr.vmem [resolvable:$false] %s721_s23 }
  0x18   : > { %s219_s11 = scalar_lea.vmem %s947_s0, %s628_s8  ;;  %s213_s8 = sand.u32 1, %s771_s19  }
  0x19   : > { %v220_v4 = vld [vmem:[%s219_s11] sm:$0xf]  ;;  %s627_s9 = sshll.u32 %s213_s8, 3  ;;  %s723_s25 = scalar_lea.vmem %s722_s23, 256 }
  0x1a   : > { %225 = vrot.lane.b32.xlu0 %v220_v4, %s784_s16  ;;  %657 = vmatpush3.msk.msra.mxu1 %vm231_vm1, %v220_v4  ;;  %s215_s11 = scalar_lea.vmem [#allocation2], %s627_s9  ;;  %s551_s16 = scalar_lea.sflag [#allocation3], %s213_s8 }
  0x1b   : > { %666 = vmatprep.subr.mxu1 %v781_v0  ;;  %659 = vmatmul.mubr.msk.f32.vlgmr.msra.gmra.mrb[0].mxu1 %vm227_vm2, %v221_v3  ;;  %s564_s12 = sshll.u32 %s215_s11, 4  ;;  %s907_s12 = int_to_ptr.vmem [resolvable:$true] %s564_s12 }
  0x1c   : > { %668 = vmatprep.mubr.msk.f32.mxu1 %vm782_vm0, %v781_v0  ;;  %p724_p0 = scmp.lt.s32.totalorder %s907_s12, %s722_s23 }
  0x1e   : > { %381 = vrot.lane.b32.xlu0 %v220_v4, %s785_s17  ;;  %s717_s17 = scalar_lea.vmem %s907_s12, 128 }
  0x1f   : > { %p718_p11 = scmp.ne.s32.totalorder %s907_s12, %s717_s17  ;;  %p725_p1 = scmp.lt.s32.totalorder %s723_s25, %s717_s17 }
  0x21   : > { %p719_p12 = pnand %p718_p11, %p855_p5  ;;  %p726_p2 = por %p725_p1, %p724_p0 }
  0x23   : > { %p720_p13 = pneg %p719_p12 }
  0x25   : > { %p727_p3 = pnand %p726_p2, %p720_p13 }
  0x8c   : > { %v226_v7 = vpop.permute.xlu0 %225 }
  0x8d   : > { %652 = vmatpush3.msk.msra.mxu0 %vm231_vm1, %v226_v7  ;;  %667 = vmatpush3.msk.msra.mxu1 %vm231_vm1, %v226_v7 }
  0x8e   : > { %654 = vmatmul.mubr.msk.f32.vlgmr.msra.gmra.mrb[0].mxu0 %vm227_vm2, %v629_v6  ;;  %661 = vmatprep.subr.mxu0 %v781_v0 }
  0x8f   : > { %663 = vmatprep.mubr.msk.f32.mxu0 %vm782_vm0, %v781_v0  ;;  %669 = vmatmul.mubr.msk.f32.vlgmr.msra.gmra.mrb[2].mxu1 %vm227_vm2, %v467_v8 }
  0x90   : > { %v382_v10 = vpop.permute.xlu0 %381  ;;  %v463_v14 = vpop.permute.xlu1 %462 }
  0x91   : > { %662 = vmatpush3.msk.msra.mxu0 %vm231_vm1, %v382_v10 }
  0x92   : > { %664 = vmatmul.mubr.msk.f32.vlgmr.msra.gmra.mrb[2].mxu0 %vm227_vm2, %v634_v9 }
  0x94   : > { %v472_v22 = vpop.permute.xlu1 %471 }
  0xee   : > { %v375_v11 = vpop.f32.mrb[0].mxu1 }
  0xef   : > { %v660_v12 = vpop.f32.mrb[1].mxu1 }
 0x161   : > { %v300_v13 = vpop.f32.mrb[0].mxu0 }
 0x162   : > { %v376_v15 = vadd.f32 %v375_v11, %v300_v13  ;;  %v655_v16 = vpop.f32.mrb[1].mxu0  ;;  %v543_v17 = vpop.f32.mrb[2].mxu1 }
 0x163   : > { %v670_v18 = vpop.f32.mrb[3].mxu1  ;;  %v544_v25 = vadd.f32 %v543_v17, %v472_v22 }
 0x165   : > { %v454_v19 = vpop.f32.mrb[2].mxu0 }
 0x166   : > { %v458_v20 = vadd.f32 %v454_v19, %v376_v15  ;;  %v665_v21 = vpop.f32.mrb[3].mxu0 }
 0x168   : > { %v465_v23 = vadd.f32 %v463_v14, %v458_v20 }
 0x16a   : > { %v466_v24 = vmax.f32 %v465_v23, 0.0 }
 0x16c   : > { %v547_v26 = vadd.f32 %v544_v25, %v466_v24 }
 0x16e   : > { %549 = vst.msk [vmem:[%s215_s11] sm:$0xff] %vm548_vm3, %v547_v26 }
 0x16f   : > { %730 = shalt.err (!%p727_p3)
}
 0x170   : > { %s731_s26 = scalar_lea.hbm %s905_s15, 128  ;;  %s735_s7 = scalar_lea.hbm %s952_s5, 256 }
 0x171   : > { %p732_p4 = scmp.ne.s32.totalorder %s905_s15, %s731_s26  ;;  %p736_p9 = scmp.lt.u32.totalorder %s905_s15, %s952_s5 }
 0x172   : > { %p737_p10 = scmp.lt.u32.totalorder %s735_s7, %s731_s26  ;;  %p739_p12 = scmp.lt.u32.totalorder %s731_s26, %s905_s15 }
 0x173   : > { %p733_p7 = pnand %p732_p4, %p855_p5 }
 0x174   : > { %p738_p11 = por %p737_p10, %p736_p9 }
 0x175   : > { %p734_p8 = pneg %p733_p7 }
 0x176   : > { %p740_p13 = por %p739_p12, %p738_p11 }
 0x178   : > { %p741_p0 = pnand %p740_p13, %p734_p8 }
 0x17a   : > { %744 = shalt.err (!%p741_p0)
}
 0x17b   : > { %671 = dma.vmem_to_hbm [thread:$0]  (%p855_p5), %s907_s12, 128, %s905_s15, %s551_s16  }
 0x17c PF: > { %p677_p1 = scmp.ge.s32.totalorder %s779_s21, 2  ;;  %s576_s10 = sand.u32 1, %s767_s18  }
 0x17d   : > { %s577_s11 = scalar_lea.sflag [#allocation3], %s576_s10 }
 0x17e   : > { %p674_p2 = pnand %p677_p1, %p859_p6 }
 0x180   : > { %762 = dma.done.wait (!%p674_p2), %s577_s11, 128  }
 0x181   : > { %764 = vsyncadd (!%p674_p2), %s577_s11, 4294967168  ;;  %p15_p3 = scmp.ge.s32.totalorder %s842_s24, 4   ;;  %s955_s18 = smov %s771_s19 }
 0x182   : > { %s956_s19 = smov %s775_s20  ;;  %s957_s20 = smov %s853_s27 }
 0x183   : > { %s958_s21 = smov %s842_s24  ;;  %17 = sbr.rel (!%p15_p3) target bundleno = 3 (0x3), region = 77 }
 0x18a   :  { %582 = vsyncpa [#allocation3], 1 }
 0x18b   :  { %584 = vsyncpa [#allocation3 + $0x1], 1 }

</bundles_post_ra>
